<compile_context>
chip_gen: v5e
topology: v5e:2x2
jax: 0.10.0
libtpu: 0.0.40
codegen_flags: <defaults>
</compile_context>

<pallas_src>
import jax
import jax.numpy as jnp
from jax import lax
from jax.experimental import pallas as pl
from jax.experimental.pallas import tpu as pltpu

NUM_ACTIONS = 3
NUM_DEVICES = 3

H1 = 64
H2 = 32
OUT = NUM_ACTIONS * NUM_DEVICES      # 9
OUT_PAD = 16                         # 9 -> 16: two full (8,128) sublane tiles


def _round_up(n, m):
    return ((n + m - 1) // m) * m


def _dqn_kernel(x_ref, w1_ref, b1_ref, w2_ref, b2_ref, w3_ref, b3_ref, o_ref):
    # x_ref: (TB, S) in native (batch, feature) layout.  Every matmul contracts
    # on the feature axis and yields a feature-major (features, TB) result, so
    # the batch sits on the lane axis and the output store is lane-dense.
    x = x_ref[...]                                            # (TB, S) compute dtype
    # fc1 + relu: w1 (H1, S) contracted with x (TB, S) on S -> (H1, TB).
    # bf16 x bf16 feeds the MXU; accumulation is f32.
    h1 = lax.dot_general(w1_ref[...], x, (((1,), (1,)), ((), ())),
                         preferred_element_type=jnp.float32)
    h1 = jnp.maximum(h1 + b1_ref[...], 0.0)                   # (H1, TB) f32, stays f32
    # fc2 + relu: (H2, H1) @ (H1, TB) -> (H2, TB).  Upcasting the tiny resident
    # weight tile is cheap; h1/h2 are kept f32 (no per-element downcast passes).
    h2 = jnp.dot(w2_ref[...].astype(jnp.float32), h1,
                 preferred_element_type=jnp.float32)
    h2 = jnp.maximum(h2 + b2_ref[...], 0.0)                   # (H2, TB) f32
    # fc3 (no activation): (OUT_PAD, H2) @ (H2, TB) -> (OUT_PAD, TB).
    o = jnp.dot(w3_ref[...].astype(jnp.float32), h2,
                preferred_element_type=jnp.float32)
    o_ref[...] = (o + b3_ref[...]).astype(o_ref.dtype)        # lane-dense store
    # TODO(synk): if bundle dumps show vld/vst spill saturation at very large
    # TB, strip-mine the fc1->relu->fc2->relu->fc3 chain over 256-512-lane
    # sub-chunks with lax.fori_loop(unroll=True) to keep h1/h2 in vregs.


def dqn_forward(x, params, *, block_b=16384, compute_dtype=jnp.bfloat16):
    """x: (B, state_size) -> (B, NUM_DEVICES, NUM_ACTIONS) float32.

    block_b: requested batch tile (lane axis inside the kernel); rounded to a
             multiple of 128 and auto-capped by a per-step VMEM budget that is
             safe on v5e/v6e/v7x.  Sweep 4096..32768 for large batches.
    compute_dtype: storage dtype for x / weights.  bf16 (default) halves the
             dominant x DMA bytes and activation VMEM; accumulation and the
             output stay f32.  Use jnp.float32 for an exact path.
    """
    w1, b1, w2, b2, w3, b3 = params      # PyTorch layout: w (out, in), b (out, 1)
    B, S = x.shape
    assert w1.shape == (H1, S)

    csize = jnp.dtype(compute_dtype).itemsize
    # Per-step VMEM working set, per lane of the batch tile:
    #   x double-buffer + out double-buffer + h1/h2 (if Mosaic materializes them)
    per_lane = 2 * S * csize + 2 * OUT_PAD * 4 + (H1 + H2) * 4
    budget = 24 << 20                    # safe on v5e/v6e/v7x
    tb_cap = max(128, (budget // per_lane) // 128 * 128)

    block_b = max(128, _round_up(block_b, 128))
    tb = min(block_b, tb_cap, _round_up(B, 128))
    b_pad = _round_up(B, tb)
    grid = (b_pad // tb,)

    xc = x.astype(compute_dtype)                      # (B, S), native layout
    if b_pad != B:
        xc = jnp.pad(xc, ((0, b_pad - B), (0, 0)))    # pad batch rows only

    w1c = w1.astype(compute_dtype)
    w2c = w2.astype(compute_dtype)
    # fc3: zero-pad 9 -> 16 output rows so the output block is two full (8,128)
    # sublane tiles (unmasked vst, aligned writeback DMA).
    w3c = jnp.pad(w3, ((0, OUT_PAD - OUT), (0, 0))).astype(compute_dtype)
    b1f = b1.astype(jnp.float32)
    b2f = b2.astype(jnp.float32)
    b3f = jnp.pad(b3.astype(jnp.float32), ((0, OUT_PAD - OUT), (0, 0)))

    # Weights/biases: constant block index -> DMA'd once, VMEM-resident across
    # all batch tiles (no re-DMA per grid step).
    resident = lambda a: pl.BlockSpec(a.shape, lambda i: (0, 0))

    # Explicit VMEM limit: large tiles exceed v5e's 16 MiB scoped default;
    # keep a comfortable margin under v7x's 64 MiB physical VMEM.
    est = tb * per_lane + (1 << 20)
    vmem_limit = int(min(max(est + (8 << 20), 32 << 20), 56 << 20))

    out_T = pl.pallas_call(
        _dqn_kernel,
        out_shape=jax.ShapeDtypeStruct((OUT_PAD, b_pad), jnp.float32),
        grid=grid,
        in_specs=[
            pl.BlockSpec((tb, S), lambda i: (i, 0)),   # x: native layout, tiled over batch
            resident(w1c), resident(b1f),
            resident(w2c), resident(b2f),
            resident(w3c), resident(b3f),
        ],
        out_specs=pl.BlockSpec((OUT_PAD, tb), lambda i: (0, i)),
        compiler_params=pltpu.CompilerParams(
            # Batch tiles are independent.
            # TODO(synk): on v7x, confirm both TensorCores are engaged; if not,
            # switch this axis to pltpu.CORE_PARALLEL (resident weights are a
            # few KiB, per-core duplication is free).
            dimension_semantics=("parallel",),
            vmem_limit_bytes=vmem_limit,
        ),
    )(xc, w1c, b1f, w2c, b2f, w3c, b3f)

    # (OUT_PAD, b_pad) -> (B, OUT) -> (B, NUM_DEVICES, NUM_ACTIONS)
    out = out_T[:OUT, :B].T
    return out.reshape(-1, NUM_DEVICES, NUM_ACTIONS)


def init_params(key, state_size):
    """nn.Linear-style init, weights kept in PyTorch (out, in) layout."""
    def linear(k, fan_in, fan_out):
        kw, kb = jax.random.split(k)
        bound = float(1.0 / (fan_in ** 0.5))
        w = jax.random.uniform(kw, (fan_out, fan_in), jnp.float32, -bound, bound)
        b = jax.random.uniform(kb, (fan_out, 1), jnp.float32, -bound, bound)
        return w, b

    k1, k2, k3 = jax.random.split(key, 3)
    w1, b1 = linear(k1, state_size, H1)
    w2, b2 = linear(k2, H1, H2)
    w3, b3 = linear(k3, H2, OUT)
    return (w1, b1, w2, b2, w3, b3)


def _reference(x, params):
    w1, b1, w2, b2, w3, b3 = params
    h1 = jnp.maximum(x @ w1.T + b1.T, 0.0)
    h2 = jnp.maximum(h1 @ w2.T + b2.T, 0.0)
    o = h2 @ w3.T + b3.T
    return o.reshape(-1, NUM_DEVICES, NUM_ACTIONS)


if __name__ == "__main__":
    key = jax.random.PRNGKey(0)
    kx, kp, kx2 = jax.random.split(key, 3)

    state_size = 16
    params = init_params(kp, state_size)

    # Exact f32 path, single grid step, small batch.
    x = jax.random.normal(kx, (8, state_size), jnp.float32)
    out = jax.block_until_ready(dqn_forward(x, params, compute_dtype=jnp.float32))
    ref = _reference(x, params)
    assert out.shape == (8, NUM_DEVICES, NUM_ACTIONS), out.shape
    assert jnp.allclose(out, ref, atol=1e-5, rtol=1e-4), "f32 mismatch vs reference"

    # Multi-tile path: B not a multiple of the tile, grid > 1, resident weights,
    # default bf16 storage (f32 accumulation / f32 output).
    x2 = jax.random.normal(kx2, (200, state_size), jnp.float32)
    out2 = jax.block_until_ready(dqn_forward(x2, params, block_b=128))
    ref2 = _reference(x2, params)
    assert out2.shape == (200, NUM_DEVICES, NUM_ACTIONS), out2.shape
    assert jnp.allclose(out2, ref2, atol=5e-2, rtol=5e-2), "bf16 tiled mismatch"

    # Default big-tile config (tile auto-capped by the VMEM budget / batch size).
    out3 = jax.block_until_ready(dqn_forward(x2, params))
    assert out3.shape == (200, NUM_DEVICES, NUM_ACTIONS), out3.shape
    assert jnp.allclose(out3, ref2, atol=5e-2, rtol=5e-2), "bf16 default-tile mismatch"

    print("KERNEL_OK")
</pallas_src>

<mosaic_0001>
module attributes {stable_mosaic.version = 11 : i64} {
  func.func @_dqn_kernel(%arg0: i32, %arg1: memref<128x16xf32, #tpu.memory_space<vmem>>, %arg2: memref<64x16xf32, #tpu.memory_space<vmem>>, %arg3: memref<64x1xf32, #tpu.memory_space<vmem>>, %arg4: memref<32x64xf32, #tpu.memory_space<vmem>>, %arg5: memref<32x1xf32, #tpu.memory_space<vmem>>, %arg6: memref<16x32xf32, #tpu.memory_space<vmem>>, %arg7: memref<16x1xf32, #tpu.memory_space<vmem>>, %arg8: memref<16x128xf32, #tpu.memory_space<vmem>>) attributes {dimension_semantics = [#tpu.dimension_semantics<parallel>], iteration_bounds = array<i64: 1>, scalar_prefetch = 0 : i64, scratch_operands = 0 : i64, tpu.core_type = #tpu.core_type<tc>, window_params = [{transform_indices = @transform_0, window_bounds = array<i64: 128, 16>}, {pipeline_mode = #tpu.pipeline_mode<synchronous>, transform_indices = @transform_1, window_bounds = array<i64: 64, 16>}, {pipeline_mode = #tpu.pipeline_mode<synchronous>, transform_indices = @transform_2, window_bounds = array<i64: 64, 1>}, {pipeline_mode = #tpu.pipeline_mode<synchronous>, transform_indices = @transform_3, window_bounds = array<i64: 32, 64>}, {pipeline_mode = #tpu.pipeline_mode<synchronous>, transform_indices = @transform_4, window_bounds = array<i64: 32, 1>}, {pipeline_mode = #tpu.pipeline_mode<synchronous>, transform_indices = @transform_5, window_bounds = array<i64: 16, 32>}, {pipeline_mode = #tpu.pipeline_mode<synchronous>, transform_indices = @transform_6, window_bounds = array<i64: 16, 1>}, {transform_indices = @transform_7, window_bounds = array<i64: 16, 128>}]} {
    %c0 = arith.constant 0 : index
    %c0_0 = arith.constant 0 : index
    %0 = vector.load %arg1[%c0, %c0_0] : memref<128x16xf32, #tpu.memory_space<vmem>>, vector<128x16xf32>
    %c0_1 = arith.constant 0 : index
    %c0_2 = arith.constant 0 : index
    %1 = vector.load %arg2[%c0_1, %c0_2] : memref<64x16xf32, #tpu.memory_space<vmem>>, vector<64x16xf32>
    %cst = arith.constant dense<0.000000e+00> : vector<64x128xf32>
    %2 = tpu.matmul %1, %0, %cst {dimension_numbers = #tpu.dot_dimension_numbers<[1], [1], [0], [0], [0, 0, 1, 0], [], []>} : vector<64x16xf32>, vector<128x16xf32>, vector<64x128xf32> -> vector<64x128xf32>
    %c0_3 = arith.constant 0 : index
    %c0_4 = arith.constant 0 : index
    %3 = vector.load %arg3[%c0_3, %c0_4] : memref<64x1xf32, #tpu.memory_space<vmem>>, vector<64x1xf32>
    %4 = vector.broadcast %3 : vector<64x1xf32> to vector<64x128xf32>
    %5 = arith.addf %2, %4 : vector<64x128xf32>
    %cst_5 = arith.constant 0.000000e+00 : f32
    %6 = vector.broadcast %cst_5 : f32 to vector<64x128xf32>
    %7 = arith.maximumf %5, %6 : vector<64x128xf32>
    %c0_6 = arith.constant 0 : index
    %c0_7 = arith.constant 0 : index
    %8 = vector.load %arg4[%c0_6, %c0_7] : memref<32x64xf32, #tpu.memory_space<vmem>>, vector<32x64xf32>
    %cst_8 = arith.constant dense<0.000000e+00> : vector<32x128xf32>
    %9 = tpu.matmul %8, %7, %cst_8 {dimension_numbers = #tpu.dot_dimension_numbers<[1], [0], [0], [1], [0, 0, 1, 1], [], []>} : vector<32x64xf32>, vector<64x128xf32>, vector<32x128xf32> -> vector<32x128xf32>
    %c0_9 = arith.constant 0 : index
    %c0_10 = arith.constant 0 : index
    %10 = vector.load %arg5[%c0_9, %c0_10] : memref<32x1xf32, #tpu.memory_space<vmem>>, vector<32x1xf32>
    %11 = vector.broadcast %10 : vector<32x1xf32> to vector<32x128xf32>
    %12 = arith.addf %9, %11 : vector<32x128xf32>
    %cst_11 = arith.constant 0.000000e+00 : f32
    %13 = vector.broadcast %cst_11 : f32 to vector<32x128xf32>
    %14 = arith.maximumf %12, %13 : vector<32x128xf32>
    %c0_12 = arith.constant 0 : index
    %c0_13 = arith.constant 0 : index
    %15 = vector.load %arg6[%c0_12, %c0_13] : memref<16x32xf32, #tpu.memory_space<vmem>>, vector<16x32xf32>
    %cst_14 = arith.constant dense<0.000000e+00> : vector<16x128xf32>
    %16 = tpu.matmul %15, %14, %cst_14 {dimension_numbers = #tpu.dot_dimension_numbers<[1], [0], [0], [1], [0, 0, 1, 1], [], []>} : vector<16x32xf32>, vector<32x128xf32>, vector<16x128xf32> -> vector<16x128xf32>
    %c0_15 = arith.constant 0 : index
    %c0_16 = arith.constant 0 : index
    %17 = vector.load %arg7[%c0_15, %c0_16] : memref<16x1xf32, #tpu.memory_space<vmem>>, vector<16x1xf32>
    %18 = vector.broadcast %17 : vector<16x1xf32> to vector<16x128xf32>
    %19 = arith.addf %16, %18 : vector<16x128xf32>
    %c0_17 = arith.constant 0 : index
    %c0_18 = arith.constant 0 : index
    %20 = vector.load %arg8[%c0_17, %c0_18] : memref<16x128xf32, #tpu.memory_space<vmem>>, vector<16x128xf32>
    tpu.vector_store %arg8[%c0_17, %c0_18], %19 {strides = array<i32>} : memref<16x128xf32, #tpu.memory_space<vmem>>, vector<16x128xf32>,
    return
  }
  func.func @transform_0(%arg0: i32) -> (i32, i32) {
    %c0_i32 = arith.constant 0 : i32
    %c0_i32_0 = arith.constant 0 : i32
    return %arg0, %c0_i32 : i32, i32
  }
  func.func @transform_1(%arg0: i32) -> (i32, i32) {
    %c0_i32 = arith.constant 0 : i32
    %c0_i32_0 = arith.constant 0 : i32
    %c0_i32_1 = arith.constant 0 : i32
    return %c0_i32, %c0_i32_0 : i32, i32
  }
  func.func @transform_2(%arg0: i32) -> (i32, i32) {
    %c0_i32 = arith.constant 0 : i32
    %c0_i32_0 = arith.constant 0 : i32
    %c0_i32_1 = arith.constant 0 : i32
    return %c0_i32, %c0_i32_0 : i32, i32
  }
  func.func @transform_3(%arg0: i32) -> (i32, i32) {
    %c0_i32 = arith.constant 0 : i32
    %c0_i32_0 = arith.constant 0 : i32
    %c0_i32_1 = arith.constant 0 : i32
    return %c0_i32, %c0_i32_0 : i32, i32
  }
  func.func @transform_4(%arg0: i32) -> (i32, i32) {
    %c0_i32 = arith.constant 0 : i32
    %c0_i32_0 = arith.constant 0 : i32
    %c0_i32_1 = arith.constant 0 : i32
    return %c0_i32, %c0_i32_0 : i32, i32
  }
  func.func @transform_5(%arg0: i32) -> (i32, i32) {
    %c0_i32 = arith.constant 0 : i32
    %c0_i32_0 = arith.constant 0 : i32
    %c0_i32_1 = arith.constant 0 : i32
    return %c0_i32, %c0_i32_0 : i32, i32
  }
  func.func @transform_6(%arg0: i32) -> (i32, i32) {
    %c0_i32 = arith.constant 0 : i32
    %c0_i32_0 = arith.constant 0 : i32
    %c0_i32_1 = arith.constant 0 : i32
    return %c0_i32, %c0_i32_0 : i32, i32
  }
  func.func @transform_7(%arg0: i32) -> (i32, i32) {
    %c0_i32 = arith.constant 0 : i32
    %c0_i32_0 = arith.constant 0 : i32
    return %c0_i32, %arg0 : i32, i32
  }
}

</mosaic_0001>

<bundles_post_ra>
// kernel: tpu_custom_call.1
= control target key start
LH: loop header
LB: loop body
LE: loop exit
PB: predicated region body
PF: predicated region fallthrough
CT: control target
= control target key end

     0   :  { %vm99_vm0 = vcmask 130048   ;;  %s657_s0 = inlined_call_operand.vmem [shape: f32[128,16], index: 0, kind: input, shape index: {}]   ;;  %s658_s1 = inlined_call_operand.vmem [shape: f32[64,16], index: 1, kind: input, shape index: {}]   ;;  %s659_s2 = inlined_call_operand.vmem [shape: f32[64,1], index: 2, kind: input, shape index: {}]   ;;  %s660_s3 = inlined_call_operand.vmem [shape: f32[32,64], index: 3, kind: input, shape index: {}]   ;;  %s661_s4 = inlined_call_operand.vmem [shape: f32[32,1], index: 4, kind: input, shape index: {}]   ;;  %s662_s5 = inlined_call_operand.vmem [shape: f32[16,32], index: 5, kind: input, shape index: {}]   ;;  %s663_s6 = inlined_call_operand.vmem [shape: f32[16,1], index: 6, kind: input, shape index: {}]   ;;  %s664_s7 = inlined_call_operand.hbm [shape: f32[16,128], index: 7, kind: output, shape index: {}]  }
   0x1   :  { %v42_v0 = vld [vmem:[%s657_s0 + $0x78] sm:$0xff]  ;;  %v41_v1 = vld [vmem:[%s657_s0 + $0x70] sm:$0xff] }
   0x2   :  { %389 = vmatpush.xpose.msk.msra.mxu3 %vm99_vm0, %v42_v0  ;;  %359 = vmatpush.xpose.msk.msra.mxu0 %vm99_vm0, %v42_v0 }
   0x3   :  { %12 = vsyncpa [#allocation3], 0  ;;  %v40_v2 = vld [vmem:[%s657_s0 + $0x68] sm:$0xff]  ;;  %v39_v3 = vld [vmem:[%s657_s0 + $0x60] sm:$0xff]  ;;  %v438_v9 = vmov 0   ;;  %vm249_vm1 = vcmask 523264  }
   0x4   :  { %v38_v4 = vld [vmem:[%s657_s0 + $0x58] sm:$0xff]  ;;  %v37_v5 = vld [vmem:[%s657_s0 + $0x50] sm:$0xff]  ;;  %v36_v6 = vld [vmem:[%s657_s0 + $0x48] sm:$0xff]  ;;  %409 = vset.pattern.permute.xlu0 %v438_v9  ;;  %410 = vset.pattern.permute.xlu1 %v438_v9  ;;  %vm309_vm2 = vcmask 261120   ;;  %s439_s13 = smov [#allocation2]   ;;  %s347_s16 = sshll.u32 %s664_s7, 4  ;;  %s348_s16 = int_to_ptr.hbm [resolvable:$true] %s347_s16 }
   0x5   :  { %v35_v7 = vld [vmem:[%s657_s0 + $0x40] sm:$0xff]  ;;  %v34_v8 = vld [vmem:[%s657_s0 + $0x38] sm:$0xff]  ;;  %411 = vset.pattern.permute.xlu2 %v438_v9  ;;  %v33_v11 = vld [vmem:[%s657_s0 + $0x30] sm:$0xff]  ;;  %s345_s14 = sshll.u32 %s439_s13, 4  ;;  %s440_s17 = smov 128   ;;  %s346_s14 = int_to_ptr.vmem [resolvable:$true] %s345_s14 }
   0x6   :  { %390 = vmatpush.xpose.msk.msra.mxu3 %vm99_vm0, %v41_v1  ;;  %360 = vmatpush.xpose.msk.msra.mxu0 %vm99_vm0, %v41_v1  ;;  %v58_v10 = vld [vmem:[%s659_s2 + $0x38] sm:$0xff]  ;;  %v32_v12 = vld [vmem:[%s657_s0 + $0x28] sm:$0xff]  ;;  %v57_v13 = vld [vmem:[%s659_s2 + $0x30] sm:$0xff]  ;;  %s441_s18 = smov 8  }
   0x7   :  { %96 = vperm.xlu0 %409, %v58_v10   ;;  %v31_v14 = vld [vmem:[%s657_s0 + $0x20] sm:$0xff]  ;;  %v30_v15 = vld [vmem:[%s657_s0 + $0x18] sm:$0xff]  ;;  %v52_v16 = vld [vmem:[%s659_s2 + $0x8] sm:$0xff] }
   0x8   :  { %v29_v17 = vld [vmem:[%s657_s0 + $0x10] sm:$0xff]  ;;  %v28_v18 = vld [vmem:[%s657_s0 + $0x8] sm:$0xff]  ;;  %v27_v20 = vld [vmem:[%s657_s0] sm:$0xff] }
   0x9   :  { %v56_v19 = vld [vmem:[%s659_s2 + $0x28] sm:$0xff]  ;;  %v55_v22 = vld [vmem:[%s659_s2 + $0x20] sm:$0xff]  ;;  %v45_v23 = vld [vmem:[%s658_s1 + $0x10] sm:$0xff] }
   0xa   :  { %391 = vmatpush.xpose.msk.msra.mxu3 %vm99_vm0, %v40_v2  ;;  %361 = vmatpush.xpose.msk.msra.mxu0 %vm99_vm0, %v40_v2  ;;  %v44_v21 = vld [vmem:[%s658_s1 + $0x8] sm:$0xff]  ;;  %v54_v24 = vld [vmem:[%s659_s2 + $0x18] sm:$0xff]  ;;  %v51_v25 = vld [vmem:[%s659_s2] sm:$0xff] }
   0xb   :  { %86 = vperm.xlu1 %410, %v56_v19   ;;  %76 = vperm.xlu2 %411, %v54_v24   ;;  %v46_v26 = vld [vmem:[%s658_s1 + $0x18] sm:$0xff]  ;;  %v53_v27 = vld [vmem:[%s659_s2 + $0x10] sm:$0xff]  ;;  %v43_v29 = vld [vmem:[%s658_s1] sm:$0xff] }
   0xc   :  { %v227_v28 = vld [vmem:[%s661_s4 + $0x10] sm:$0xff]  ;;  %v226_v30 = vld [vmem:[%s661_s4 + $0x8] sm:$0xff]  ;;  %v47_v31 = vld [vmem:[%s658_s1 + $0x20] sm:$0xff] }
   0xd   :  { %v297_v32 = vld [vmem:[%s663_s6] sm:$0xff]  ;;  %v228_v33 = vld [vmem:[%s661_s4 + $0x18] sm:$0xff]  ;;  %v298_v34 = vld [vmem:[%s663_s6 + $0x8] sm:$0xff] }
   0xe   :  { %392 = vmatpush.xpose.msk.msra.mxu3 %vm99_vm0, %v39_v3  ;;  %362 = vmatpush.xpose.msk.msra.mxu0 %vm99_vm0, %v39_v3  ;;  %v48_v35 = vld [vmem:[%s658_s1 + $0x28] sm:$0xff]  ;;  %v225_v36 = vld [vmem:[%s661_s4] sm:$0xff]  ;;  %v49_v37 = vld [vmem:[%s658_s1 + $0x30] sm:$0xff] }
   0xf   :  { %91 = vperm.xlu0 %409, %v57_v13   ;;  %v50_v38 = vld [vmem:[%s658_s1 + $0x38] sm:$0xff]  ;;  %v223_v9 = vld [vmem:[%s660_s3 + $0x10] sm:$0xff] }
  0x10   :  { %v224_v10 = vld [vmem:[%s660_s3 + $0x18] sm:$0xff] }
  0x12   :  { %393 = vmatpush.xpose.msk.msra.mxu3 %vm99_vm0, %v38_v4  ;;  %363 = vmatpush.xpose.msk.msra.mxu0 %vm99_vm0, %v38_v4 }
  0x13   :  { %81 = vperm.xlu1 %410, %v55_v22   ;;  %71 = vperm.xlu2 %411, %v53_v27   ;;  %v295_v27 = vld [vmem:[%s662_s5] sm:$0xff] }
  0x16   :  { %394 = vmatpush.xpose.msk.msra.mxu3 %vm99_vm0, %v37_v5  ;;  %364 = vmatpush.xpose.msk.msra.mxu0 %vm99_vm0, %v37_v5 }
  0x17   :  { %66 = vperm.xlu0 %409, %v52_v16  }
  0x1a   :  { %395 = vmatpush.xpose.msk.msra.mxu3 %vm99_vm0, %v36_v6  ;;  %365 = vmatpush.xpose.msk.msra.mxu0 %vm99_vm0, %v36_v6 }
  0x1b   :  { %61 = vperm.xlu1 %410, %v51_v25   ;;  %246 = vperm.xlu2 %411, %v228_v33  }
  0x1e   :  { %396 = vmatpush.xpose.msk.msra.mxu3 %vm99_vm0, %v35_v7  ;;  %366 = vmatpush.xpose.msk.msra.mxu0 %vm99_vm0, %v35_v7  ;;  %v221_v7 = vld [vmem:[%s660_s3] sm:$0xff] }
  0x1f   :  { %241 = vperm.xlu0 %409, %v227_v28   ;;  %v296_v28 = vld [vmem:[%s662_s5 + $0x8] sm:$0xff] }
  0x22   :  { %397 = vmatpush.xpose.msk.msra.mxu3 %vm99_vm0, %v34_v8  ;;  %367 = vmatpush.xpose.msk.msra.mxu0 %vm99_vm0, %v34_v8  ;;  %v222_v8 = vld [vmem:[%s660_s3 + $0x8] sm:$0xff] }
  0x23   :  { %236 = vperm.xlu1 %410, %v226_v30   ;;  %231 = vperm.xlu2 %411, %v225_v36  }
  0x26   :  { %398 = vmatpush.xpose.msk.msra.mxu3 %vm99_vm0, %v33_v11  ;;  %368 = vmatpush.xpose.msk.msra.mxu0 %vm99_vm0, %v33_v11 }
  0x27   :  { %301 = vperm.xlu0 %409, %v297_v32  }
  0x2a   :  { %399 = vmatpush.xpose.msk.msra.mxu3 %vm99_vm0, %v32_v12  ;;  %369 = vmatpush.xpose.msk.msra.mxu0 %vm99_vm0, %v32_v12 }
  0x2b   :  { %306 = vperm.xlu1 %410, %v298_v34  }
  0x2e   :  { %400 = vmatpush.xpose.msk.msra.mxu3 %vm99_vm0, %v31_v14  ;;  %370 = vmatpush.xpose.msk.msra.mxu0 %vm99_vm0, %v31_v14 }
  0x32   :  { %401 = vmatpush.xpose.msk.msra.mxu3 %vm99_vm0, %v30_v15  ;;  %371 = vmatpush.xpose.msk.msra.mxu0 %vm99_vm0, %v30_v15 }
  0x36   :  { %402 = vmatpush.xpose.msk.msra.mxu3 %vm99_vm0, %v29_v17  ;;  %372 = vmatpush.xpose.msk.msra.mxu0 %vm99_vm0, %v29_v17 }
  0x3a   :  { %403 = vmatpush.xpose.msk.msra.mxu3 %vm99_vm0, %v28_v18  ;;  %373 = vmatpush.xpose.msk.msra.mxu0 %vm99_vm0, %v28_v18 }
  0x3e   :  { %404 = vmatpush.xpose.msk.msra.mxu3 %vm99_vm0, %v27_v20  ;;  %374 = vmatpush.xpose.msk.msra.mxu0 %vm99_vm0, %v27_v20 }
  0x41   :  { %376 = vmatmul.msk.f32.vlgmr.msra.gmra.mxu3 %vm99_vm0, %v44_v21  ;;  %375 = vmatmul.msk.f32.vlgmr.msra.gmra.mxu0 %vm99_vm0, %v43_v29 }
  0x49   :  { %377 = vmatmul.msk.f32.gmra.mxu3 %vm99_vm0, %v45_v23 }
  0x51   :  { %378 = vmatmul.msk.f32.gmra.mxu3 %vm99_vm0, %v46_v26 }
  0x59   :  { %379 = vmatmul.msk.f32.gmra.mxu3 %vm99_vm0, %v47_v31 }
  0x61   :  { %380 = vmatmul.msk.f32.gmra.mxu3 %vm99_vm0, %v48_v35 }
  0x65   :  { %v77_v47 = vpop.permute.xlu2 %76 }
  0x69   :  { %381 = vmatmul.msk.f32.gmra.mxu3 %vm99_vm0, %v49_v37 }
  0x6d   :  { %v72_v57 = vpop.permute.xlu2 %71 }
  0x71   :  { %382 = vmatmul.msk.f32.gmra.mxu3 %vm99_vm0, %v50_v38 }
  0x75   :  { %v247_v14 = vpop.permute.xlu2 %246 }
  0x79   :  { %v97_v44 = vpop.permute.xlu0 %96 }
  0x7d   :  { %v87_v45 = vpop.permute.xlu1 %86  ;;  %v232_v22 = vpop.permute.xlu2 %231 }
  0x81   :  { %v92_v48 = vpop.permute.xlu0 %91 }
  0x85   :  { %v82_v52 = vpop.permute.xlu1 %81 }
  0x89   :  { %v67_v60 = vpop.permute.xlu0 %66 }
  0x8d   :  { %v62_v2 = vpop.permute.xlu1 %61 }
  0x91   :  { %v242_v15 = vpop.permute.xlu0 %241 }
  0x95   :  { %v237_v19 = vpop.permute.xlu1 %236 }
  0x99   :  { %v302_v29 = vpop.permute.xlu0 %301 }
  0x9d   :  { %v307_v32 = vpop.permute.xlu1 %306 }
  0xbe   :  { %v189_v63 = vpop.f32.mrf.mxu0 }
  0xbf   :  { %v190_v4 = vadd.f32 %v189_v63, %v62_v2 }
  0xc1   :  { %v213_v6 = vmax.f32 %v190_v4, 0.0 }
  0xc4   :  { %v192_v39 = vpop.f32.mrf.mxu3 }
  0xc5   :  { %v193_v0 = vadd.f32 %v192_v39, %v67_v60 }
  0xc7   :  { %v214_v5 = vmax.f32 %v193_v0, 0.0 }
  0xcc   :  { %v195_v40 = vpop.f32.mrf.mxu3 }
  0xcd   :  { %v196_v61 = vadd.f32 %v195_v40, %v72_v57 }
  0xcf   :  { %v215_v3 = vmax.f32 %v196_v61, 0.0 }
  0xd4   :  { %v198_v41 = vpop.f32.mrf.mxu3 }
  0xd5   :  { %v199_v58 = vadd.f32 %v198_v41, %v77_v47 }
  0xd7   :  { %v216_v1 = vmax.f32 %v199_v58, 0.0 }
  0xdc   :  { %v201_v42 = vpop.f32.mrf.mxu3 }
  0xdd   :  { %v202_v55 = vadd.f32 %v201_v42, %v82_v52 }
  0xdf   :  { %v217_v62 = vmax.f32 %v202_v55, 0.0 }
  0xe4   :  { %v204_v43 = vpop.f32.mrf.mxu3 }
  0xe5   :  { %v205_v53 = vadd.f32 %v204_v43, %v87_v45 }
  0xe7   :  { %v218_v59 = vmax.f32 %v205_v53, 0.0 }
  0xec   :  { %v207_v46 = vpop.f32.mrf.mxu3 }
  0xed   :  { %v208_v50 = vadd.f32 %v207_v46, %v92_v48 }
  0xef   :  { %v219_v56 = vmax.f32 %v208_v50, 0.0 }
  0xf4   :  { %v210_v49 = vpop.f32.mrf.mxu3 }
  0xf5   :  { %v211_v51 = vadd.f32 %v210_v49, %v97_v44 }
  0xf7   :  { %v220_v54 = vmax.f32 %v211_v51, 0.0 }
  0xf9   :  { %270 = vmatpush.msra.mxu1 %v220_v54 }
  0xfb   :  { %271 = vmatpush.msra.mxu1 %v219_v56 }
  0xfd   :  { %272 = vmatpush.msra.mxu1 %v218_v59 }
  0xff   :  { %273 = vmatpush.msra.mxu1 %v217_v62 }
 0x101   :  { %274 = vmatpush.msra.mxu1 %v216_v1 }
 0x103   :  { %275 = vmatpush.msra.mxu1 %v215_v3 }
 0x105   :  { %276 = vmatpush.msra.mxu1 %v214_v5 }
 0x107   :  { %277 = vmatpush.msra.mxu1 %v213_v6 }
 0x108   :  { %383 = vmatmul.msk.f32.vlgmr.msra.gmra.mxu1 %vm249_vm1, %v221_v7 }
 0x110   :  { %384 = vmatmul.msk.f32.gmra.mxu1 %vm249_vm1, %v222_v8 }
 0x118   :  { %385 = vmatmul.msk.f32.gmra.mxu1 %vm249_vm1, %v223_v9 }
 0x120   :  { %386 = vmatmul.msk.f32.gmra.mxu1 %vm249_vm1, %v224_v10 }
 0x185   :  { %v279_v11 = vpop.f32.mrf.mxu1 }
 0x186   :  { %v280_v23 = vadd.f32 %v279_v11, %v232_v22 }
 0x188   :  { %v291_v26 = vmax.f32 %v280_v23, 0.0 }
 0x18d   :  { %v282_v12 = vpop.f32.mrf.mxu1 }
 0x18e   :  { %v283_v20 = vadd.f32 %v282_v12, %v237_v19 }
 0x190   :  { %v292_v25 = vmax.f32 %v283_v20, 0.0 }
 0x195   :  { %v285_v13 = vpop.f32.mrf.mxu1 }
 0x196   :  { %v286_v17 = vadd.f32 %v285_v13, %v242_v15 }
 0x198   :  { %v293_v24 = vmax.f32 %v286_v17, 0.0 }
 0x19d   :  { %v288_v16 = vpop.f32.mrf.mxu1 }
 0x19e   :  { %v289_v18 = vadd.f32 %v288_v16, %v247_v14 }
 0x1a0   :  { %v294_v21 = vmax.f32 %v289_v18, 0.0 }
 0x1a2   :  { %328 = vmatpush.msra.mxu2 %v294_v21 }
 0x1a4   :  { %329 = vmatpush.msra.mxu2 %v293_v24 }
 0x1a6   :  { %330 = vmatpush.msra.mxu2 %v292_v25 }
 0x1a8   :  { %331 = vmatpush.msra.mxu2 %v291_v26 }
 0x1a9   :  { %387 = vmatmul.msk.f32.vlgmr.msra.gmra.mxu2 %vm309_vm2, %v295_v27 }
 0x1b1   :  { %388 = vmatmul.msk.f32.gmra.mxu2 %vm309_vm2, %v296_v28 }
 0x22c   :  { %v333_v30 = vpop.f32.mrf.mxu2 }
 0x22d   :  { %v334_v31 = vadd.f32 %v333_v30, %v302_v29 }
 0x22f   :  { %339 = vst [vmem:[#allocation2] sm:$0xff] %v334_v31 }
 0x234   :  { %v336_v33 = vpop.f32.mrf.mxu2 }
 0x235   :  { %v337_v34 = vadd.f32 %v336_v33, %v307_v32 }
 0x237   :  { %340 = vst [vmem:[#allocation2 + $0x8] sm:$0xff] %v337_v34 }
 0x238   :  { %353 = dma.vmem_to_hbm [thread:$0]  %s346_s14, 256, %s348_s16, [#allocation3], %s440_s17, %s440_s17, %s441_s18  }
 0x239   :  { %436 = dma.done.wait [#allocation3], 256  }
 0x23a   :  { %437 = vsyncadd [#allocation3], 4294967040 }
 0x23b   :  { %358 = vsyncpa [#allocation3], 1 }

</bundles_post_ra>
